<compile_context>
chip_gen: v6e
topology: v6e:2x2x1
jax: 0.10.0
libtpu: 0.0.40
codegen_flags: <defaults>
</compile_context>

<pallas_src>
import functools

import jax
import jax.numpy as jnp
from jax.experimental import pallas as pl
from jax.experimental.pallas import tpu as pltpu

IN_DIM = 4
HID = 64
LAT = 2
PACK = 3 * LAT          # z / mu / logvar rows in the packed output
OUT_ROWS = 8            # padded to a full sublane tile -> unmasked store
LANE = 128


def _cdiv(a, b):
    return -(-a // b)


def _elu(v):
    # F.elu(alpha=1.0).  Both branches of jnp.where are evaluated, so the exp
    # argument is clamped to <= 0 (never overflows).
    # TODO(synk): switch the negative branch to jnp.expm1 once lax.expm1_p
    # Mosaic lowering is confirmed; exp(x)-1 loses ~1 ulp near 0^- (negligible
    # for this model) but is guaranteed to lower.
    return jnp.where(v > 0, v, jnp.exp(jnp.minimum(v, 0.0)) - 1.0)


def encoder_kernel(x_ref, eps_ref,
                   w1_ref, b1_ref, w2_ref, b2_ref, w3_ref, b3_ref,
                   w45_ref, b45_ref, out_ref):
    # x_ref: (IN_DIM, bm), eps_ref: (LAT, bm) -- batch on the lane axis.
    # Weights arrive as bf16 (cast once in the wrapper); biases are f32.
    x = x_ref[...].astype(jnp.bfloat16)

    h = _elu(jnp.dot(w1_ref[...], x,
                     preferred_element_type=jnp.float32) + b1_ref[...])
    h = _elu(jnp.dot(w2_ref[...], h.astype(jnp.bfloat16),
                     preferred_element_type=jnp.float32) + b2_ref[...])
    h = _elu(jnp.dot(w3_ref[...], h.astype(jnp.bfloat16),
                     preferred_element_type=jnp.float32) + b3_ref[...])

    # Fused mu/logvar head: (2*LAT, HID) x (HID, bm).  Rows [0:2]=mu, [2:4]=logvar.
    mlv = jnp.dot(w45_ref[...], h.astype(jnp.bfloat16),
                  preferred_element_type=jnp.float32) + b45_ref[...]
    mu = mlv[:LAT, :]
    logvar = mlv[LAT:, :]

    # Reparameterize (training path): z = eps * exp(0.5 * logvar) + mu.
    z = eps_ref[...] * jnp.exp(0.5 * logvar) + mu

    # Single full-tile (8, bm) unmasked store: rows [0:2]=z, [2:4]=mu,
    # [4:6]=logvar, [6:8]=padding.  (mlv is already [mu; logvar].)
    pad = jnp.zeros((OUT_ROWS - PACK, z.shape[1]), jnp.float32)
    out_ref[...] = jnp.concatenate([z, mlv, pad], axis=0)


def _choose_tiling(B, max_block_b):
    """Pick (bm, b_pad, n_tiles): bm a multiple of 128, >=2 grid steps whenever
    there are >=2 lane groups (keeps both v7x TensorCores busy), and padding
    bounded by (lane groups per tile - 1) * 128 instead of a full bm."""
    cap = max(LANE, (int(max_block_b) // LANE) * LANE)   # clamp cap to 128-multiple
    n128 = _cdiv(B, LANE)                 # lane groups of batch
    n_tiles = _cdiv(n128, cap // LANE)    # minimum tiles under the cap
    if n128 >= 2:
        n_tiles = max(n_tiles, 2)         # v7x megacore: avoid a 1-step grid
    g = _cdiv(n128, n_tiles)              # lane groups per tile
    bm = g * LANE
    b_pad = n_tiles * bm
    return bm, b_pad, n_tiles


@functools.partial(jax.jit, static_argnames=("max_block_b",))
def encoder_forward(x, eps, params, *, max_block_b=2048):
    """x: (B, 4) f32, eps: (B, 2) f32 std-normal noise.  Returns (z, mu, logvar)."""
    B = x.shape[0]
    (w1, b1), (w2, b2), (w3, b3), (w4, b4), (w5, b5) = params

    # Fuse the two heads; cast matmul weights to bf16 once (MXU-native on
    # v5e/v6e/v7x, f32 accumulate keeps precision).
    w45 = jnp.concatenate([w4, w5], axis=0)                    # (2*LAT, HID)
    b45 = jnp.concatenate([b4, b5], axis=0).astype(jnp.float32)  # (2*LAT, 1)
    w1b, w2b, w3b, w45b = (w.astype(jnp.bfloat16) for w in (w1, w2, w3, w45))

    bm, b_pad, n_tiles = _choose_tiling(B, max_block_b)
    # VMEM note: x tile 4*bm*4B + eps 2*bm*4B + out 8*bm*4B + ~20 KiB weights
    # ~= 0.24 MiB at bm=4096 (double-buffered) -- not a constraint on any chip.

    xt = jnp.zeros((IN_DIM, b_pad), jnp.float32).at[:, :B].set(x.T)
    epst = jnp.zeros((LAT, b_pad), jnp.float32).at[:, :B].set(eps.T)

    def full(a):  # weights/biases: whole array, constant across the grid
        return pl.BlockSpec(a.shape, lambda i: (0,) * a.ndim)

    weight_bytes = (sum(int(w.size) * 2 for w in (w1b, w2b, w3b, w45b))
                    + sum(int(b.size) * 4 for b in (b1, b2, b3, b45)))
    cost = pl.CostEstimate(
        flops=2 * b_pad * (IN_DIM * HID + 2 * HID * HID + HID * 2 * LAT)
              + 8 * b_pad * HID,
        transcendentals=b_pad * (3 * HID + LAT),
        bytes_accessed=4 * b_pad * (IN_DIM + LAT + OUT_ROWS) + weight_bytes,
    )

    packed = pl.pallas_call(
        encoder_kernel,
        out_shape=jax.ShapeDtypeStruct((OUT_ROWS, b_pad), jnp.float32),
        grid_spec=pltpu.PrefetchScalarGridSpec(
            num_scalar_prefetch=0,
            grid=(n_tiles,),
            in_specs=[
                pl.BlockSpec((IN_DIM, bm), lambda i: (0, i)),   # x^T tile
                pl.BlockSpec((LAT, bm), lambda i: (0, i)),      # eps^T tile
                full(w1b), full(b1),
                full(w2b), full(b2),
                full(w3b), full(b3),
                full(w45b), full(b45),
            ],
            out_specs=pl.BlockSpec((OUT_ROWS, bm), lambda i: (0, i)),
        ),
        compiler_params=pltpu.CompilerParams(
            dimension_semantics=("parallel",)),
        cost_estimate=cost,
    )(xt, epst, w1b, b1, w2b, b2, w3b, b3, w45b, b45)

    # One transpose of the packed slab; z/mu/logvar are cheap slices of it.
    zml = packed[:PACK, :B].T            # (B, 6)
    z = zml[:, :LAT]
    mu = zml[:, LAT:2 * LAT]
    logvar = zml[:, 2 * LAT:]
    return z, mu, logvar


def init_params(key):
    """nn.Linear-style init (uniform +-1/sqrt(fan_in)).
    Weights stored PyTorch-native (out, in); biases stored (out, 1)."""
    dims = [(HID, IN_DIM), (HID, HID), (HID, HID), (LAT, HID), (LAT, HID)]
    params = []
    for (fan_out, fan_in) in dims:
        key, kw, kb = jax.random.split(key, 3)
        bound = float(fan_in) ** -0.5
        w = jax.random.uniform(kw, (fan_out, fan_in), jnp.float32,
                               minval=-bound, maxval=bound)
        b = jax.random.uniform(kb, (fan_out, 1), jnp.float32,
                               minval=-bound, maxval=bound)
        params.append((w, b))
    return tuple(params)


def reference_forward(x, eps, params, mxu_dtype=jnp.float32):
    """Pure-JAX reference.  mxu_dtype=jnp.bfloat16 mirrors the kernel's
    bf16-operand / f32-accumulate matmuls for a matched-precision check."""
    (w1, b1), (w2, b2), (w3, b3), (w4, b4), (w5, b5) = params

    def lin(h, w, b):
        return jnp.dot(h.astype(mxu_dtype), w.T.astype(mxu_dtype),
                       preferred_element_type=jnp.float32) + b[:, 0]

    h1 = _elu(lin(x, w1, b1))
    h2 = _elu(lin(h1, w2, b2))
    h3 = _elu(lin(h2, w3, b3))
    mu = lin(h3, w4, b4)
    logvar = lin(h3, w5, b5)
    z = eps * jnp.exp(0.5 * logvar) + mu
    return z, mu, logvar


if __name__ == "__main__":
    key = jax.random.PRNGKey(0)
    kp, kx, ke = jax.random.split(key, 3)

    params = init_params(kp)
    B = 8
    x = jax.random.uniform(kx, (B, IN_DIM), jnp.float32)   # toy one-hot-ish input
    eps = jax.random.normal(ke, (B, LAT), jnp.float32)     # reparameterization noise

    z, mu, logvar = encoder_forward(x, eps, params)
    jax.block_until_ready((z, mu, logvar))

    # Matched-precision reference (bf16 MXU operands, f32 accumulate).
    z_m, mu_m, lv_m = reference_forward(x, eps, params, mxu_dtype=jnp.bfloat16)
    assert jnp.allclose(z, z_m, atol=2e-4, rtol=2e-4)
    assert jnp.allclose(mu, mu_m, atol=2e-4, rtol=2e-4)
    assert jnp.allclose(logvar, lv_m, atol=2e-4, rtol=2e-4)

    # Loose sanity check vs. full-f32 reference (bf16 matmul rounding budget).
    z_f, mu_f, lv_f = reference_forward(x, eps, params)
    assert jnp.allclose(z, z_f, atol=1e-1, rtol=1e-1)
    assert jnp.allclose(mu, mu_f, atol=1e-1, rtol=1e-1)
    assert jnp.allclose(logvar, lv_f, atol=1e-1, rtol=1e-1)

    print("KERNEL_OK")
</pallas_src>

<mosaic_0001>
module attributes {stable_mosaic.version = 11 : i64} {
  func.func @encoder_kernel(%arg0: i32, %arg1: memref<4x128xf32, #tpu.memory_space<vmem>>, %arg2: memref<2x128xf32, #tpu.memory_space<vmem>>, %arg3: memref<64x4xbf16, #tpu.memory_space<vmem>>, %arg4: memref<64x1xf32, #tpu.memory_space<vmem>>, %arg5: memref<64x64xbf16, #tpu.memory_space<vmem>>, %arg6: memref<64x1xf32, #tpu.memory_space<vmem>>, %arg7: memref<64x64xbf16, #tpu.memory_space<vmem>>, %arg8: memref<64x1xf32, #tpu.memory_space<vmem>>, %arg9: memref<4x64xbf16, #tpu.memory_space<vmem>>, %arg10: memref<4x1xf32, #tpu.memory_space<vmem>>, %arg11: memref<8x128xf32, #tpu.memory_space<vmem>>) attributes {dimension_semantics = [#tpu.dimension_semantics<parallel>], iteration_bounds = array<i64: 1>, scalar_prefetch = 0 : i64, scratch_operands = 0 : i64, tpu.core_type = #tpu.core_type<tc>, window_params = [{transform_indices = @transform_0, window_bounds = array<i64: 4, 128>}, {transform_indices = @transform_1, window_bounds = array<i64: 2, 128>}, {pipeline_mode = #tpu.pipeline_mode<synchronous>, transform_indices = @transform_2, window_bounds = array<i64: 64, 4>}, {pipeline_mode = #tpu.pipeline_mode<synchronous>, transform_indices = @transform_3, window_bounds = array<i64: 64, 1>}, {pipeline_mode = #tpu.pipeline_mode<synchronous>, transform_indices = @transform_4, window_bounds = array<i64: 64, 64>}, {pipeline_mode = #tpu.pipeline_mode<synchronous>, transform_indices = @transform_5, window_bounds = array<i64: 64, 1>}, {pipeline_mode = #tpu.pipeline_mode<synchronous>, transform_indices = @transform_6, window_bounds = array<i64: 64, 64>}, {pipeline_mode = #tpu.pipeline_mode<synchronous>, transform_indices = @transform_7, window_bounds = array<i64: 64, 1>}, {pipeline_mode = #tpu.pipeline_mode<synchronous>, transform_indices = @transform_8, window_bounds = array<i64: 4, 64>}, {pipeline_mode = #tpu.pipeline_mode<synchronous>, transform_indices = @transform_9, window_bounds = array<i64: 4, 1>}, {transform_indices = @transform_10, window_bounds = array<i64: 8, 128>}]} {
    %c0 = arith.constant 0 : index
    %c0_0 = arith.constant 0 : index
    %0 = vector.load %arg1[%c0, %c0_0] : memref<4x128xf32, #tpu.memory_space<vmem>>, vector<4x128xf32>
    %1 = arith.truncf %0 : vector<4x128xf32> to vector<4x128xbf16>
    %c0_1 = arith.constant 0 : index
    %c0_2 = arith.constant 0 : index
    %2 = vector.load %arg3[%c0_1, %c0_2] : memref<64x4xbf16, #tpu.memory_space<vmem>>, vector<64x4xbf16>
    %cst = arith.constant dense<0.000000e+00> : vector<64x128xf32>
    %3 = tpu.matmul %2, %1, %cst {dimension_numbers = #tpu.dot_dimension_numbers<[1], [0], [0], [1], [0, 0, 1, 1], [], []>} : vector<64x4xbf16>, vector<4x128xbf16>, vector<64x128xf32> -> vector<64x128xf32>
    %c0_3 = arith.constant 0 : index
    %c0_4 = arith.constant 0 : index
    %4 = vector.load %arg4[%c0_3, %c0_4] : memref<64x1xf32, #tpu.memory_space<vmem>>, vector<64x1xf32>
    %5 = vector.broadcast %4 : vector<64x1xf32> to vector<64x128xf32>
    %6 = arith.addf %3, %5 : vector<64x128xf32>
    %cst_5 = arith.constant 0.000000e+00 : f32
    %7 = vector.broadcast %cst_5 : f32 to vector<64x128xf32>
    %8 = arith.cmpf ogt, %6, %7 : vector<64x128xf32>
    %cst_6 = arith.constant 0.000000e+00 : f32
    %9 = vector.broadcast %cst_6 : f32 to vector<64x128xf32>
    %10 = arith.minimumf %6, %9 : vector<64x128xf32>
    %11 = math.exp %10 : vector<64x128xf32>
    %cst_7 = arith.constant 1.000000e+00 : f32
    %12 = vector.broadcast %cst_7 : f32 to vector<64x128xf32>
    %13 = arith.subf %11, %12 : vector<64x128xf32>
    %14 = arith.select %8, %6, %13 : vector<64x128xi1>, vector<64x128xf32>
    %c0_8 = arith.constant 0 : index
    %c0_9 = arith.constant 0 : index
    %15 = vector.load %arg5[%c0_8, %c0_9] : memref<64x64xbf16, #tpu.memory_space<vmem>>, vector<64x64xbf16>
    %16 = arith.truncf %14 : vector<64x128xf32> to vector<64x128xbf16>
    %cst_10 = arith.constant dense<0.000000e+00> : vector<64x128xf32>
    %17 = tpu.matmul %15, %16, %cst_10 {dimension_numbers = #tpu.dot_dimension_numbers<[1], [0], [0], [1], [0, 0, 1, 1], [], []>} : vector<64x64xbf16>, vector<64x128xbf16>, vector<64x128xf32> -> vector<64x128xf32>
    %c0_11 = arith.constant 0 : index
    %c0_12 = arith.constant 0 : index
    %18 = vector.load %arg6[%c0_11, %c0_12] : memref<64x1xf32, #tpu.memory_space<vmem>>, vector<64x1xf32>
    %19 = vector.broadcast %18 : vector<64x1xf32> to vector<64x128xf32>
    %20 = arith.addf %17, %19 : vector<64x128xf32>
    %cst_13 = arith.constant 0.000000e+00 : f32
    %21 = vector.broadcast %cst_13 : f32 to vector<64x128xf32>
    %22 = arith.cmpf ogt, %20, %21 : vector<64x128xf32>
    %cst_14 = arith.constant 0.000000e+00 : f32
    %23 = vector.broadcast %cst_14 : f32 to vector<64x128xf32>
    %24 = arith.minimumf %20, %23 : vector<64x128xf32>
    %25 = math.exp %24 : vector<64x128xf32>
    %cst_15 = arith.constant 1.000000e+00 : f32
    %26 = vector.broadcast %cst_15 : f32 to vector<64x128xf32>
    %27 = arith.subf %25, %26 : vector<64x128xf32>
    %28 = arith.select %22, %20, %27 : vector<64x128xi1>, vector<64x128xf32>
    %c0_16 = arith.constant 0 : index
    %c0_17 = arith.constant 0 : index
    %29 = vector.load %arg7[%c0_16, %c0_17] : memref<64x64xbf16, #tpu.memory_space<vmem>>, vector<64x64xbf16>
    %30 = arith.truncf %28 : vector<64x128xf32> to vector<64x128xbf16>
    %cst_18 = arith.constant dense<0.000000e+00> : vector<64x128xf32>
    %31 = tpu.matmul %29, %30, %cst_18 {dimension_numbers = #tpu.dot_dimension_numbers<[1], [0], [0], [1], [0, 0, 1, 1], [], []>} : vector<64x64xbf16>, vector<64x128xbf16>, vector<64x128xf32> -> vector<64x128xf32>
    %c0_19 = arith.constant 0 : index
    %c0_20 = arith.constant 0 : index
    %32 = vector.load %arg8[%c0_19, %c0_20] : memref<64x1xf32, #tpu.memory_space<vmem>>, vector<64x1xf32>
    %33 = vector.broadcast %32 : vector<64x1xf32> to vector<64x128xf32>
    %34 = arith.addf %31, %33 : vector<64x128xf32>
    %cst_21 = arith.constant 0.000000e+00 : f32
    %35 = vector.broadcast %cst_21 : f32 to vector<64x128xf32>
    %36 = arith.cmpf ogt, %34, %35 : vector<64x128xf32>
    %cst_22 = arith.constant 0.000000e+00 : f32
    %37 = vector.broadcast %cst_22 : f32 to vector<64x128xf32>
    %38 = arith.minimumf %34, %37 : vector<64x128xf32>
    %39 = math.exp %38 : vector<64x128xf32>
    %cst_23 = arith.constant 1.000000e+00 : f32
    %40 = vector.broadcast %cst_23 : f32 to vector<64x128xf32>
    %41 = arith.subf %39, %40 : vector<64x128xf32>
    %42 = arith.select %36, %34, %41 : vector<64x128xi1>, vector<64x128xf32>
    %c0_24 = arith.constant 0 : index
    %c0_25 = arith.constant 0 : index
    %43 = vector.load %arg9[%c0_24, %c0_25] : memref<4x64xbf16, #tpu.memory_space<vmem>>, vector<4x64xbf16>
    %44 = arith.truncf %42 : vector<64x128xf32> to vector<64x128xbf16>
    %cst_26 = arith.constant dense<0.000000e+00> : vector<4x128xf32>
    %45 = tpu.matmul %43, %44, %cst_26 {dimension_numbers = #tpu.dot_dimension_numbers<[1], [0], [0], [1], [0, 0, 1, 1], [], []>} : vector<4x64xbf16>, vector<64x128xbf16>, vector<4x128xf32> -> vector<4x128xf32>
    %c0_27 = arith.constant 0 : index
    %c0_28 = arith.constant 0 : index
    %46 = vector.load %arg10[%c0_27, %c0_28] : memref<4x1xf32, #tpu.memory_space<vmem>>, vector<4x1xf32>
    %47 = vector.broadcast %46 : vector<4x1xf32> to vector<4x128xf32>
    %48 = arith.addf %45, %47 : vector<4x128xf32>
    %49 = vector.extract_strided_slice %48 {offsets = [0, 0], sizes = [2, 128], strides = [1, 1]} : vector<4x128xf32> to vector<2x128xf32>
    %50 = vector.extract_strided_slice %48 {offsets = [2, 0], sizes = [2, 128], strides = [1, 1]} : vector<4x128xf32> to vector<2x128xf32>
    %c0_29 = arith.constant 0 : index
    %c0_30 = arith.constant 0 : index
    %51 = vector.load %arg2[%c0_29, %c0_30] : memref<2x128xf32, #tpu.memory_space<vmem>>, vector<2x128xf32>
    %cst_31 = arith.constant 5.000000e-01 : f32
    %52 = vector.broadcast %cst_31 : f32 to vector<2x128xf32>
    %53 = arith.mulf %52, %50 : vector<2x128xf32>
    %54 = math.exp %53 : vector<2x128xf32>
    %55 = arith.mulf %51, %54 : vector<2x128xf32>
    %56 = arith.addf %55, %49 : vector<2x128xf32>
    %cst_32 = arith.constant 0.000000e+00 : f32
    %57 = vector.broadcast %cst_32 : f32 to vector<2x128xf32>
    %58 = tpu.concatenate %56, %48, %57 in 0 : vector<2x128xf32>, vector<4x128xf32>, vector<2x128xf32> -> vector<8x128xf32>
    %c0_33 = arith.constant 0 : index
    %c0_34 = arith.constant 0 : index
    %59 = vector.load %arg11[%c0_33, %c0_34] : memref<8x128xf32, #tpu.memory_space<vmem>>, vector<8x128xf32>
    tpu.vector_store %arg11[%c0_33, %c0_34], %58 {strides = array<i32>} : memref<8x128xf32, #tpu.memory_space<vmem>>, vector<8x128xf32>,
    return
  }
  func.func @transform_0(%arg0: i32) -> (i32, i32) {
    %c0_i32 = arith.constant 0 : i32
    %c0_i32_0 = arith.constant 0 : i32
    return %c0_i32, %arg0 : i32, i32
  }
  func.func @transform_1(%arg0: i32) -> (i32, i32) {
    %c0_i32 = arith.constant 0 : i32
    %c0_i32_0 = arith.constant 0 : i32
    return %c0_i32, %arg0 : i32, i32
  }
  func.func @transform_2(%arg0: i32) -> (i32, i32) {
    %c0_i32 = arith.constant 0 : i32
    %c0_i32_0 = arith.constant 0 : i32
    %c0_i32_1 = arith.constant 0 : i32
    return %c0_i32, %c0_i32_0 : i32, i32
  }
  func.func @transform_3(%arg0: i32) -> (i32, i32) {
    %c0_i32 = arith.constant 0 : i32
    %c0_i32_0 = arith.constant 0 : i32
    %c0_i32_1 = arith.constant 0 : i32
    return %c0_i32, %c0_i32_0 : i32, i32
  }
  func.func @transform_4(%arg0: i32) -> (i32, i32) {
    %c0_i32 = arith.constant 0 : i32
    %c0_i32_0 = arith.constant 0 : i32
    %c0_i32_1 = arith.constant 0 : i32
    return %c0_i32, %c0_i32_0 : i32, i32
  }
  func.func @transform_5(%arg0: i32) -> (i32, i32) {
    %c0_i32 = arith.constant 0 : i32
    %c0_i32_0 = arith.constant 0 : i32
    %c0_i32_1 = arith.constant 0 : i32
    return %c0_i32, %c0_i32_0 : i32, i32
  }
  func.func @transform_6(%arg0: i32) -> (i32, i32) {
    %c0_i32 = arith.constant 0 : i32
    %c0_i32_0 = arith.constant 0 : i32
    %c0_i32_1 = arith.constant 0 : i32
    return %c0_i32, %c0_i32_0 : i32, i32
  }
  func.func @transform_7(%arg0: i32) -> (i32, i32) {
    %c0_i32 = arith.constant 0 : i32
    %c0_i32_0 = arith.constant 0 : i32
    %c0_i32_1 = arith.constant 0 : i32
    return %c0_i32, %c0_i32_0 : i32, i32
  }
  func.func @transform_8(%arg0: i32) -> (i32, i32) {
    %c0_i32 = arith.constant 0 : i32
    %c0_i32_0 = arith.constant 0 : i32
    %c0_i32_1 = arith.constant 0 : i32
    return %c0_i32, %c0_i32_0 : i32, i32
  }
  func.func @transform_9(%arg0: i32) -> (i32, i32) {
    %c0_i32 = arith.constant 0 : i32
    %c0_i32_0 = arith.constant 0 : i32
    %c0_i32_1 = arith.constant 0 : i32
    return %c0_i32, %c0_i32_0 : i32, i32
  }
  func.func @transform_10(%arg0: i32) -> (i32, i32) {
    %c0_i32 = arith.constant 0 : i32
    %c0_i32_0 = arith.constant 0 : i32
    return %c0_i32, %arg0 : i32, i32
  }
}

</mosaic_0001>

<bundles_post_ra>
// kernel: encoder_forward.1
= control target key start
LH: loop header
LB: loop body
LE: loop exit
PB: predicated region body
PF: predicated region fallthrough
CT: control target
= control target key end

     0   :  { %vm127_vm0 = vcmask 1041408   ;;  %vm114_vm1 = vcmask 31744   ;;  %v926_v1 = vmov 0   ;;  %vm324_vm2 = vcmask 523264   ;;  %s1183_s0 = inlined_call_operand.vmem [shape: f32[4,128], index: 0, kind: input, shape index: {}]   ;;  %s1184_s2 = inlined_call_operand.vmem [shape: bf16[64,4], index: 2, kind: input, shape index: {}]   ;;  %s1185_s3 = inlined_call_operand.vmem [shape: f32[64,1], index: 3, kind: input, shape index: {}]   ;;  %s1186_s5 = inlined_call_operand.vmem [shape: f32[64,1], index: 5, kind: input, shape index: {}]   ;;  %s1187_s7 = inlined_call_operand.vmem [shape: f32[64,1], index: 7, kind: input, shape index: {}]   ;;  %s1188_s9 = inlined_call_operand.vmem [shape: f32[4,1], index: 9, kind: input, shape index: {}]   ;;  %s1189_s4 = inlined_call_operand.vmem [shape: bf16[64,64], index: 4, kind: input, shape index: {}]   ;;  %s1190_s6 = inlined_call_operand.vmem [shape: bf16[64,64], index: 6, kind: input, shape index: {}]   ;;  %s1191_s8 = inlined_call_operand.vmem [shape: bf16[4,64], index: 8, kind: input, shape index: {}]   ;;  %s1192_s1 = inlined_call_operand.vmem [shape: f32[2,128], index: 1, kind: input, shape index: {}]   ;;  %s1193_s10 = inlined_call_operand.vmem [shape: f32[8,128], index: 10, kind: output, shape index: {}]  }
   0x1   :  { %v36_v0 = vld [vmem:[%s1183_s0] sm:$0xf]  ;;  %862 = vset.pattern.permute.xlu0 %v926_v1  ;;  %863 = vset.pattern.permute.xlu1 %v926_v1  ;;  %v865_v5 = vld [vmem:[%s1184_s2 + $0x8] sm:$0xff]   ;;  %v866_v6 = vld [vmem:[%s1184_s2 + $0x10] sm:$0xff]  }
   0x2   :  { %v37_v2 = vpack.c.bf16 %v36_v0, %v36_v0  ;;  %v864_v3 = vld [vmem:[%s1184_s2] sm:$0xff]   ;;  %v52_v7 = vld [vmem:[%s1185_s3 + $0x30] sm:$0xff]  ;;  %v53_v9 = vld [vmem:[%s1185_s3 + $0x38] sm:$0xff] }
   0x3   :  { %806 = vmatprep.mubr.msk.bf16.mxu0 %vm114_vm1, %v864_v3  ;;  %86 = vperm.xlu0 %862, %v52_v7   ;;  %v50_v8 = vld [vmem:[%s1185_s3 + $0x20] sm:$0xff]  ;;  %v51_v10 = vld [vmem:[%s1185_s3 + $0x28] sm:$0xff]  ;;  %v48_v11 = vld [vmem:[%s1185_s3 + $0x10] sm:$0xff] }
   0x4   :  { %858 = vmatprep.subr.msk.bf16.mxu0 %vm127_vm0, %v37_v2  ;;  %v129_v4 = vsel %vm127_vm0, %v37_v2, 0  ;;  %76 = vperm.xlu1 %863, %v50_v8   ;;  %v867_v12 = vld [vmem:[%s1184_s2 + $0x18] sm:$0xff]   ;;  %v46_v14 = vld [vmem:[%s1185_s3] sm:$0xff]  ;;  %v47_v15 = vld [vmem:[%s1185_s3 + $0x8] sm:$0xff] }
   0x5   :  { %805 = vmatpush3.bf16.msra.mxu0 %v129_v4  ;;  %v49_v13 = vld [vmem:[%s1185_s3 + $0x18] sm:$0xff]  ;;  %v262_v16 = vld [vmem:[%s1186_s5 + $0x30] sm:$0xff]  ;;  %v260_v18 = vld [vmem:[%s1186_s5 + $0x20] sm:$0xff] }
   0x6   :  { %v263_v17 = vld [vmem:[%s1186_s5 + $0x38] sm:$0xff]  ;;  %v261_v19 = vld [vmem:[%s1186_s5 + $0x28] sm:$0xff]  ;;  %v258_v20 = vld [vmem:[%s1186_s5 + $0x10] sm:$0xff] }
   0x7   :  { %91 = vperm.xlu0 %862, %v53_v9   ;;  %v259_v21 = vld [vmem:[%s1186_s5 + $0x18] sm:$0xff]  ;;  %v256_v22 = vld [vmem:[%s1186_s5] sm:$0xff]  ;;  %v257_v23 = vld [vmem:[%s1186_s5 + $0x8] sm:$0xff] }
   0x8   :  { %807 = vmatmul.mubr.msk.bf16.vlgmr.msra.gmra.mxu0 %vm114_vm1, %v865_v5  ;;  %81 = vperm.xlu1 %863, %v51_v10   ;;  %v468_v24 = vld [vmem:[%s1187_s7 + $0x30] sm:$0xff]  ;;  %v469_v25 = vld [vmem:[%s1187_s7 + $0x38] sm:$0xff]  ;;  %v466_v26 = vld [vmem:[%s1187_s7 + $0x20] sm:$0xff] }
   0x9   :  { %810 = vmatprep.mubr.msk.bf16.mxu0 %vm114_vm1, %v866_v6  ;;  %v467_v27 = vld [vmem:[%s1187_s7 + $0x28] sm:$0xff]  ;;  %v464_v28 = vld [vmem:[%s1187_s7 + $0x10] sm:$0xff]  ;;  %v465_v29 = vld [vmem:[%s1187_s7 + $0x18] sm:$0xff] }
   0xa   :  { %v462_v30 = vld [vmem:[%s1187_s7] sm:$0xff]  ;;  %v463_v31 = vld [vmem:[%s1187_s7 + $0x8] sm:$0xff] }
   0xb   :  { %66 = vperm.xlu0 %862, %v48_v11   ;;  %v660_v32 = vld [vmem:[%s1188_s9] sm:$0xf] }
   0xc   :  { %71 = vperm.xlu1 %863, %v49_v13   ;;  %v868_v33 = vld [vmem:[%s1189_s4] sm:$0xff]  }
   0xd   :  { %822 = vmatprep.mubr.msk.bf16.mxu1 %vm324_vm2, %v868_v33 }
   0xf   :  { %56 = vperm.xlu0 %862, %v46_v14  }
  0x10   :  { %811 = vmatmul.mubr.msk.bf16.gmra.mxu0 %vm114_vm1, %v867_v12  ;;  %61 = vperm.xlu1 %863, %v47_v15  }
  0x13   :  { %296 = vperm.xlu0 %862, %v262_v16  }
  0x14   :  { %301 = vperm.xlu1 %863, %v263_v17  }
  0x17   :  { %286 = vperm.xlu0 %862, %v260_v18  }
  0x18   :  { %291 = vperm.xlu1 %863, %v261_v19  }
  0x1b   :  { %276 = vperm.xlu0 %862, %v258_v20  }
  0x1c   :  { %281 = vperm.xlu1 %863, %v259_v21  }
  0x1f   :  { %266 = vperm.xlu0 %862, %v256_v22  }
  0x20   :  { %271 = vperm.xlu1 %863, %v257_v23  }
  0x23   :  { %502 = vperm.xlu0 %862, %v468_v24  }
  0x24   :  { %507 = vperm.xlu1 %863, %v469_v25  }
  0x27   :  { %492 = vperm.xlu0 %862, %v466_v26  }
  0x28   :  { %497 = vperm.xlu1 %863, %v467_v27  }
  0x2b   :  { %482 = vperm.xlu0 %862, %v464_v28  }
  0x2c   :  { %487 = vperm.xlu1 %863, %v465_v29  }
  0x2f   :  { %472 = vperm.xlu0 %862, %v462_v30  }
  0x30   :  { %477 = vperm.xlu1 %863, %v463_v31  }
  0x33   :  { %663 = vperm.xlu0 %862, %v660_v32  }
  0x7e   :  { %v87_v35 = vpop.permute.xlu0 %86 }
  0x7f   :  { %v77_v34 = vpop.permute.xlu1 %76 }
  0x82   :  { %v92_v37 = vpop.permute.xlu0 %91 }
  0x83   :  { %v82_v36 = vpop.permute.xlu1 %81 }
  0x86   :  { %v67_v42 = vpop.permute.xlu0 %66 }
  0x87   :  { %v72_v40 = vpop.permute.xlu1 %71 }
  0x8a   :  { %v57_v54 = vpop.permute.xlu0 %56 }
  0x8b   :  { %v62_v47 = vpop.permute.xlu1 %61 }
  0xc8   :  { %v808_v38 = vpop.f32.mrf.mxu0 }
  0xc9   :  { %v1086_v45 = vadd.f32 %v808_v38, %v67_v42  ;;  %v869_v38 = vld [vmem:[%s1189_s4 + $0x8] sm:$0xff]   ;;  %v302_v42 = vpop.permute.xlu1 %301 }
  0xca   :  { %v165_v39 = vpop.f32.mrf.mxu0 }
  0xcb   :  { %v206_v55 = vmin.f32 %v1086_v45, 0.0  ;;  %v1092_v57 = vadd.f32 %v165_v39, %v57_v54  ;;  %vm198_vm8 = vcmp.gt.f32.partialorder %v1086_v45, 0.0  ;;  %v870_v39 = vld [vmem:[%s1189_s4 + $0x10] sm:$0xff]  }
  0xcc   :  { %v809_v41 = vpop.f32.mrf.mxu0 }
  0xcd   :  { %v1084_v43 = vadd.f32 %v809_v41, %v72_v40  ;;  %v216_v3 = vmul.f32 1.442695, %v206_v55  ;;  %v204_v4 = vmin.f32 %v1092_v57, 0.0  ;;  %vm196_vm10 = vcmp.gt.f32.partialorder %v1092_v57, 0.0  ;;  %v871_v40 = vld [vmem:[%s1189_s4 + $0x18] sm:$0xff]   ;;  %v872_v41 = vld [vmem:[%s1190_s6] sm:$0xff]  }
  0xce   :  { %v168_v44 = vpop.f32.mrf.mxu0  ;;  %838 = vmatprep.mubr.msk.bf16.mxu0 %vm324_vm2, %v872_v41 }
  0xcf   :  { %v207_v49 = vmin.f32 %v1084_v43, 0.0  ;;  %v1089_v50 = vadd.f32 %v168_v44, %v62_v47  ;;  %v212_v9 = vmul.f32 1.442695, %v204_v4  ;;  %vm199_vm7 = vcmp.gt.f32.partialorder %v1084_v43, 0.0  ;;  %v292_v44 = vpop.permute.xlu1 %291 }
  0xd0   :  { %v812_v46 = vpop.f32.mrf.mxu0 }
  0xd1   :  { %v190_v48 = vadd.f32 %v812_v46, %v87_v35  ;;  %v218_v61 = vmul.f32 1.442695, %v207_v49  ;;  %v205_v62 = vmin.f32 %v1089_v50, 0.0  ;;  %vm197_vm9 = vcmp.gt.f32.partialorder %v1089_v50, 0.0 }
  0xd2   :  { %v181_v51 = vpop.f32.mrf.mxu0 }
  0xd3   :  { %v210_v52 = vmin.f32 %v190_v48, 0.0  ;;  %v182_v53 = vadd.f32 %v181_v51, %v77_v34  ;;  %v214_v7 = vmul.f32 1.442695, %v205_v62  ;;  %vm202_vm3 = vcmp.gt.f32.partialorder %v190_v48, 0.0 }
  0xd4   :  { %v813_v56 = vpop.f32.mrf.mxu0 }
  0xd5   :  { %v224_v58 = vmul.f32 1.442695, %v210_v52  ;;  %v208_v59 = vmin.f32 %v182_v53, 0.0  ;;  %v193_v60 = vadd.f32 %v813_v56, %v92_v37  ;;  %vm200_vm5 = vcmp.gt.f32.partialorder %v182_v53, 0.0 }
  0xd6   :  { %v184_v63 = vpop.f32.mrf.mxu0 }
  0xd7   :  { %876 = vpow2.f32 %v224_v58  ;;  %v220_v0 = vmul.f32 1.442695, %v208_v59  ;;  %v211_v1 = vmin.f32 %v193_v60, 0.0  ;;  %v185_v2 = vadd.f32 %v184_v63, %v82_v36 }
  0xd8   :  { %vm203_vm4 = vcmp.gt.f32.partialorder %v193_v60, 0.0 }
  0xd9   :  { %878 = vpow2.f32 %v220_v0  ;;  %v226_v5 = vmul.f32 1.442695, %v211_v1  ;;  %v209_v6 = vmin.f32 %v185_v2, 0.0  ;;  %vm201_vm6 = vcmp.gt.f32.partialorder %v185_v2, 0.0 }
  0xda   :  { %880 = vpow2.f32 %v218_v61 }
  0xdb   :  { %882 = vpow2.f32 %v226_v5  ;;  %v222_v8 = vmul.f32 1.442695, %v209_v6 }
  0xdc   :  { %884 = vpow2.f32 %v216_v3 }
  0xdd   :  { %886 = vpow2.f32 %v222_v8 }
  0xde   :  { %888 = vpow2.f32 %v214_v7 }
  0xdf   :  { %890 = vpow2.f32 %v212_v9 }
  0xe4   :  { %v877_v10 = vpop.eup %876 }
  0xe5   :  { %v743_v13 = vadd.f32 -1.0, %v877_v10 }
  0xe6   :  { %v879_v11 = vpop.eup %878 }
  0xe7   :  { %v881_v12 = vpop.eup %880  ;;  %v741_v17 = vadd.f32 -1.0, %v879_v11  ;;  %v242_v19 = vsel %vm202_vm3, %v190_v48, %v743_v13  ;;  %v282_v48 = vpop.permute.xlu1 %281 }
  0xe8   :  { %v883_v14 = vpop.eup %882  ;;  %v740_v22 = vadd.f32 -1.0, %v881_v12 }
  0xe9   :  { %v885_v15 = vpop.eup %884  ;;  %v744_v16 = vadd.f32 -1.0, %v883_v14  ;;  %v240_v25 = vsel %vm200_vm5, %v182_v53, %v741_v17  ;;  %vm928_vm5 = vmmov 0  }
  0xea   :  { %v887_v18 = vpop.eup %886  ;;  %v739_v27 = vadd.f32 -1.0, %v885_v15  ;;  %v239_v30 = vsel %vm199_vm7, %v1084_v43, %v740_v22  ;;  %v297_v43 = vpop.permute.xlu0 %296 }
  0xeb   :  { %v243_v20 = vsel %vm203_vm4, %v193_v60, %v744_v16  ;;  %v742_v21 = vadd.f32 -1.0, %v887_v18  ;;  %v889_v23 = vpop.eup %888 }
  0xec   :  { %v255_v24 = vpack.c.bf16 %v243_v20, %v242_v19  ;;  %v891_v28 = vpop.eup %890  ;;  %v738_v31 = vadd.f32 -1.0, %v889_v23  ;;  %v238_v32 = vsel %vm198_vm8, %v1086_v45, %v739_v27 }
  0xed   :  { %v241_v26 = vsel %vm201_vm6, %v185_v2, %v742_v21  ;;  %v737_v33 = vadd.f32 -1.0, %v891_v28  ;;  %v253_v34 = vpack.c.bf16 %v239_v30, %v238_v32 }
  0xee   :  { %814 = vmatprep.subr.bf16.mxu1 %v255_v24  ;;  %v254_v29 = vpack.c.bf16 %v241_v26, %v240_v25  ;;  %v237_v35 = vsel %vm197_vm9, %v1089_v50, %v738_v31  ;;  %v287_v45 = vpop.permute.xlu0 %286 }
  0xef   :  { %815 = vmatpush3.bf16.msra.mxu1 %v255_v24  ;;  %v236_v36 = vsel %vm196_vm10, %v1092_v57, %v737_v33  ;;  %v272_v57 = vpop.permute.xlu1 %271 }
  0xf0   :  { %816 = vmatprep.subr.bf16.mxu1 %v254_v29  ;;  %v252_v37 = vpack.c.bf16 %v237_v35, %v236_v36 }
  0xf2   :  { %v277_v50 = vpop.permute.xlu0 %276 }
  0xf3   :  { %817 = vmatpush3.bf16.msra.mxu1 %v254_v29 }
  0xf4   :  { %818 = vmatprep.subr.bf16.mxu1 %v253_v34 }
  0xf6   :  { %v267_v59 = vpop.permute.xlu0 %266 }
  0xf7   :  { %819 = vmatpush3.bf16.msra.mxu1 %v253_v34 }
  0xf8   :  { %820 = vmatprep.subr.bf16.mxu1 %v252_v37 }
  0xfb   :  { %821 = vmatpush3.bf16.msra.mxu1 %v252_v37 }
  0xfe   :  { %823 = vmatmul.mubr.msk.bf16.vlgmr.msra.gmra.mxu1 %vm324_vm2, %v869_v38 }
  0xff   :  { %826 = vmatprep.mubr.msk.bf16.mxu1 %vm324_vm2, %v870_v39 }
 0x106   :  { %827 = vmatmul.mubr.msk.bf16.gmra.mxu1 %vm324_vm2, %v871_v40 }
 0x1be   :  { %v824_v46 = vpop.f32.mrf.mxu1 }
 0x1bf   :  { %v1122_v53 = vadd.f32 %v824_v46, %v277_v50  ;;  %v873_v46 = vld [vmem:[%s1190_s6 + $0x8] sm:$0xff]   ;;  %v508_v50 = vpop.permute.xlu1 %507 }
 0x1c0   :  { %v371_v47 = vpop.f32.mrf.mxu1 }
 0x1c1   :  { %v412_v63 = vmin.f32 %v1122_v53, 0.0  ;;  %v1128_v0 = vadd.f32 %v371_v47, %v267_v59  ;;  %vm404_vm1 = vcmp.gt.f32.partialorder %v1122_v53, 0.0  ;;  %v874_v47 = vld [vmem:[%s1190_s6 + $0x10] sm:$0xff]  }
 0x1c2   :  { %v825_v49 = vpop.f32.mrf.mxu1 }
 0x1c3   :  { %v1120_v51 = vadd.f32 %v825_v49, %v282_v48  ;;  %v422_v11 = vmul.f32 1.442695, %v412_v63  ;;  %v410_v12 = vmin.f32 %v1128_v0, 0.0  ;;  %vm402_vm4 = vcmp.gt.f32.partialorder %v1128_v0, 0.0  ;;  %v875_v48 = vld [vmem:[%s1190_s6 + $0x18] sm:$0xff]  }
 0x1c4   :  { %v374_v52 = vpop.f32.mrf.mxu1  ;;  %v927_v49 = vmov 0.0  }
 0x1c5   :  { %v413_v55 = vmin.f32 %v1120_v51, 0.0  ;;  %v1125_v60 = vadd.f32 %v374_v52, %v272_v57  ;;  %v418_v17 = vmul.f32 1.442695, %v410_v12  ;;  %vm405_vm15 = vcmp.gt.f32.partialorder %v1120_v51, 0.0  ;;  %846 = vmatprep.subr.bf16.mxu1 %v927_v49  ;;  %854 = vmatprep.mubr.msk.bf16.mxu1 %vm928_vm5, %v927_v49  ;;  %v498_v52 = vpop.permute.xlu1 %497 }
 0x1c6   :  { %v828_v54 = vpop.f32.mrf.mxu1 }
 0x1c7   :  { %v396_v56 = vadd.f32 %v828_v54, %v297_v43  ;;  %v424_v2 = vmul.f32 1.442695, %v413_v55  ;;  %v411_v7 = vmin.f32 %v1125_v60, 0.0  ;;  %vm403_vm3 = vcmp.gt.f32.partialorder %v1125_v60, 0.0 }
 0x1c8   :  { %v387_v58 = vpop.f32.mrf.mxu1 }
 0x1c9   :  { %v416_v61 = vmin.f32 %v396_v56, 0.0  ;;  %v388_v62 = vadd.f32 %v387_v58, %v287_v45  ;;  %v420_v15 = vmul.f32 1.442695, %v411_v7  ;;  %vm408_vm11 = vcmp.gt.f32.partialorder %v396_v56, 0.0  ;;  %v488_v57 = vpop.permute.xlu1 %487 }
 0x1ca   :  { %v829_v1 = vpop.f32.mrf.mxu1 }
 0x1cb   :  { %v430_v3 = vmul.f32 1.442695, %v416_v61  ;;  %v414_v4 = vmin.f32 %v388_v62, 0.0  ;;  %v399_v5 = vadd.f32 %v829_v1, %v302_v42  ;;  %vm406_vm13 = vcmp.gt.f32.partialorder %v388_v62, 0.0 }
 0x1cc   :  { %v390_v6 = vpop.f32.mrf.mxu1 }
 0x1cd   :  { %892 = vpow2.f32 %v430_v3  ;;  %v426_v8 = vmul.f32 1.442695, %v414_v4  ;;  %v417_v9 = vmin.f32 %v399_v5, 0.0  ;;  %v391_v10 = vadd.f32 %v390_v6, %v292_v44  ;;  %v478_v3 = vpop.permute.xlu1 %477 }
 0x1ce   :  { %894 = vpow2.f32 %v424_v2  ;;  %vm409_vm12 = vcmp.gt.f32.partialorder %v399_v5, 0.0 }
 0x1cf   :  { %v432_v13 = vmul.f32 1.442695, %v417_v9  ;;  %896 = vpow2.f32 %v426_v8  ;;  %v415_v14 = vmin.f32 %v391_v10, 0.0  ;;  %vm407_vm14 = vcmp.gt.f32.partialorder %v391_v10, 0.0 }
 0x1d1   :  { %898 = vpow2.f32 %v432_v13  ;;  %v428_v16 = vmul.f32 1.442695, %v415_v14 }
 0x1d2   :  { %900 = vpow2.f32 %v422_v11 }
 0x1d3   :  { %902 = vpow2.f32 %v428_v16 }
 0x1d4   :  { %904 = vpow2.f32 %v420_v15 }
 0x1d5   :  { %906 = vpow2.f32 %v418_v17 }
 0x1da   :  { %v893_v18 = vpop.eup %892 }
 0x1db   :  { %v895_v19 = vpop.eup %894  ;;  %v759_v21 = vadd.f32 -1.0, %v893_v18 }
 0x1dc   :  { %v897_v20 = vpop.eup %896  ;;  %v756_v29 = vadd.f32 -1.0, %v895_v19 }
 0x1dd   :  { %v757_v25 = vadd.f32 -1.0, %v897_v20  ;;  %v448_v27 = vsel %vm408_vm11, %v396_v56, %v759_v21 }
 0x1de   :  { %v899_v22 = vpop.eup %898  ;;  %v445_v38 = vsel %vm405_vm15, %v1120_v51, %v756_v29  ;;  %v503_v51 = vpop.permute.xlu0 %502 }
 0x1df   :  { %v760_v23 = vadd.f32 -1.0, %v899_v22  ;;  %v901_v24 = vpop.eup %900  ;;  %v446_v35 = vsel %vm406_vm13, %v388_v62, %v757_v25 }
 0x1e0   :  { %v903_v26 = vpop.eup %902  ;;  %v755_v33 = vadd.f32 -1.0, %v901_v24 }
 0x1e1   :  { %v449_v28 = vsel %vm409_vm12, %v399_v5, %v760_v23  ;;  %v905_v30 = vpop.eup %904  ;;  %v758_v32 = vadd.f32 -1.0, %v903_v26 }
 0x1e2   :  { %v461_v31 = vpack.c.bf16 %v449_v28, %v448_v27  ;;  %v907_v34 = vpop.eup %906  ;;  %v754_v39 = vadd.f32 -1.0, %v905_v30  ;;  %v444_v40 = vsel %vm404_vm1, %v1122_v53, %v755_v33  ;;  %v493_v54 = vpop.permute.xlu0 %492 }
 0x1e3   :  { %v447_v36 = vsel %vm407_vm14, %v391_v10, %v758_v32  ;;  %v753_v41 = vadd.f32 -1.0, %v907_v34  ;;  %v459_v42 = vpack.c.bf16 %v445_v38, %v444_v40  ;;  %vm722_vm14 = vcmask 1045504  }
 0x1e4   :  { %830 = vmatprep.subr.bf16.mxu0 %v461_v31  ;;  %v460_v37 = vpack.c.bf16 %v447_v36, %v446_v35  ;;  %v443_v43 = vsel %vm403_vm3, %v1125_v60, %v754_v39 }
 0x1e5   :  { %831 = vmatpush3.bf16.msra.mxu0 %v461_v31  ;;  %v442_v44 = vsel %vm402_vm4, %v1128_v0, %v753_v41 }
 0x1e6   :  { %832 = vmatprep.subr.bf16.mxu0 %v460_v37  ;;  %v458_v45 = vpack.c.bf16 %v443_v43, %v442_v44  ;;  %v483_v59 = vpop.permute.xlu0 %482 }
 0x1e9   :  { %833 = vmatpush3.bf16.msra.mxu0 %v460_v37 }
 0x1ea   :  { %834 = vmatprep.subr.bf16.mxu0 %v459_v42  ;;  %v473_v10 = vpop.permute.xlu0 %472 }
 0x1ed   :  { %835 = vmatpush3.bf16.msra.mxu0 %v459_v42 }
 0x1ee   :  { %836 = vmatprep.subr.bf16.mxu0 %v458_v45 }
 0x1f1   :  { %837 = vmatpush3.bf16.msra.mxu0 %v458_v45 }
 0x1f4   :  { %839 = vmatmul.mubr.msk.bf16.vlgmr.msra.gmra.mxu0 %vm324_vm2, %v873_v46 }
 0x1f5   :  { %842 = vmatprep.mubr.msk.bf16.mxu0 %vm324_vm2, %v874_v47 }
 0x1fc   :  { %843 = vmatmul.mubr.msk.bf16.gmra.mxu0 %vm324_vm2, %v875_v48 }
 0x2b4   :  { %v840_v53 = vpop.f32.mrf.mxu0 }
 0x2b5   :  { %v1156_v63 = vadd.f32 %v840_v53, %v483_v59 }
 0x2b6   :  { %v576_v55 = vpop.f32.mrf.mxu0 }
 0x2b7   :  { %v617_v11 = vmin.f32 %v1156_v63, 0.0  ;;  %v577_v13 = vadd.f32 %v576_v55, %v473_v10  ;;  %vm609_vm11 = vcmp.gt.f32.partialorder %v1156_v63, 0.0  ;;  %v655_v55 = vld [vmem:[%s1191_s8] sm:$0x3] }
 0x2b8   :  { %v841_v56 = vpop.f32.mrf.mxu0 }
 0x2b9   :  { %v1154_v60 = vadd.f32 %v841_v56, %v488_v57  ;;  %v627_v21 = vmul.f32 1.442695, %v617_v11  ;;  %v615_v22 = vmin.f32 %v577_v13, 0.0  ;;  %vm607_vm13 = vcmp.gt.f32.partialorder %v577_v13, 0.0  ;;  %v664_v56 = vpop.permute.xlu0 %663 }
 0x2ba   :  { %v579_v58 = vpop.f32.mrf.mxu0 }
 0x2bb   :  { %v618_v4 = vmin.f32 %v1154_v60, 0.0  ;;  %v1159_v6 = vadd.f32 %v579_v58, %v478_v3  ;;  %v623_v25 = vmul.f32 1.442695, %v615_v22  ;;  %vm610_vm10 = vcmp.gt.f32.partialorder %v1154_v60, 0.0 }
 0x2bc   :  { %v844_v61 = vpop.f32.mrf.mxu0 }
 0x2bd   :  { %v601_v62 = vadd.f32 %v844_v61, %v503_v51  ;;  %v629_v17 = vmul.f32 1.442695, %v618_v4  ;;  %v616_v18 = vmin.f32 %v1159_v6, 0.0  ;;  %vm608_vm12 = vcmp.gt.f32.partialorder %v1159_v6, 0.0 }
 0x2be   :  { %v592_v0 = vpop.f32.mrf.mxu0 }
 0x2bf   :  { %v621_v1 = vmin.f32 %v601_v62, 0.0  ;;  %v593_v2 = vadd.f32 %v592_v0, %v493_v54  ;;  %v625_v24 = vmul.f32 1.442695, %v616_v18  ;;  %vm613_vm6 = vcmp.gt.f32.partialorder %v601_v62, 0.0 }
 0x2c0   :  { %v845_v5 = vpop.f32.mrf.mxu0 }
 0x2c1   :  { %v635_v7 = vmul.f32 1.442695, %v621_v1  ;;  %v619_v8 = vmin.f32 %v593_v2, 0.0  ;;  %v604_v9 = vadd.f32 %v845_v5, %v508_v50  ;;  %vm611_vm9 = vcmp.gt.f32.partialorder %v593_v2, 0.0 }
 0x2c2   :  { %v595_v12 = vpop.f32.mrf.mxu0 }
 0x2c3   :  { %908 = vpow2.f32 %v635_v7  ;;  %v631_v14 = vmul.f32 1.442695, %v619_v8  ;;  %v622_v15 = vmin.f32 %v604_v9, 0.0  ;;  %v596_v16 = vadd.f32 %v595_v12, %v498_v52 }
 0x2c4   :  { %vm614_vm7 = vcmp.gt.f32.partialorder %v604_v9, 0.0 }
 0x2c5   :  { %v637_v19 = vmul.f32 1.442695, %v622_v15  ;;  %910 = vpow2.f32 %v631_v14  ;;  %v620_v20 = vmin.f32 %v596_v16, 0.0  ;;  %vm612_vm8 = vcmp.gt.f32.partialorder %v596_v16, 0.0 }
 0x2c7   :  { %912 = vpow2.f32 %v637_v19  ;;  %v633_v23 = vmul.f32 1.442695, %v620_v20 }
 0x2c8   :  { %914 = vpow2.f32 %v629_v17 }
 0x2c9   :  { %916 = vpow2.f32 %v633_v23 }
 0x2ca   :  { %918 = vpow2.f32 %v627_v21 }
 0x2cb   :  { %920 = vpow2.f32 %v625_v24 }
 0x2cc   :  { %922 = vpow2.f32 %v623_v25 }
 0x2d0   :  { %v909_v26 = vpop.eup %908 }
 0x2d1   :  { %v775_v28 = vadd.f32 -1.0, %v909_v26 }
 0x2d2   :  { %v911_v27 = vpop.eup %910 }
 0x2d3   :  { %v653_v33 = vsel %vm613_vm6, %v601_v62, %v775_v28  ;;  %v773_v34 = vadd.f32 -1.0, %v911_v27 }
 0x2d4   :  { %v913_v29 = vpop.eup %912 }
 0x2d5   :  { %v776_v30 = vadd.f32 -1.0, %v913_v29  ;;  %v915_v31 = vpop.eup %914  ;;  %v651_v43 = vsel %vm611_vm9, %v593_v2, %v773_v34 }
 0x2d6   :  { %v917_v32 = vpop.eup %916  ;;  %v772_v39 = vadd.f32 -1.0, %v915_v31 }
 0x2d7   :  { %v654_v35 = vsel %vm614_vm7, %v604_v9, %v776_v30  ;;  %v919_v36 = vpop.eup %918  ;;  %v774_v38 = vadd.f32 -1.0, %v917_v32 }
 0x2d8   :  { %v659_v37 = vpack.c.bf16 %v654_v35, %v653_v33  ;;  %v921_v40 = vpop.eup %920  ;;  %v771_v42 = vadd.f32 -1.0, %v919_v36  ;;  %v650_v46 = vsel %vm610_vm10, %v1154_v60, %v772_v39 }
 0x2d9   :  { %v652_v41 = vsel %vm612_vm8, %v596_v16, %v774_v38  ;;  %v923_v44 = vpop.eup %922  ;;  %v770_v47 = vadd.f32 -1.0, %v921_v40 }
 0x2da   :  { %847 = vmatpush3.bf16.msra.mxu1 %v659_v37  ;;  %v658_v45 = vpack.c.bf16 %v652_v41, %v651_v43  ;;  %v649_v48 = vsel %vm609_vm11, %v1156_v63, %v771_v42  ;;  %v769_v50 = vadd.f32 -1.0, %v923_v44 }
 0x2db   :  { %848 = vmatprep.subr.bf16.mxu1 %v927_v49  ;;  %v657_v51 = vpack.c.bf16 %v650_v46, %v649_v48  ;;  %v648_v52 = vsel %vm608_vm12, %v1159_v6, %v770_v47 }
 0x2dc   :  { %v647_v53 = vsel %vm607_vm13, %v577_v13, %v769_v50 }
 0x2dd   :  { %v656_v54 = vpack.c.bf16 %v648_v52, %v647_v53 }
 0x2de   :  { %849 = vmatpush3.bf16.msra.mxu1 %v658_v45 }
 0x2df   :  { %850 = vmatprep.subr.bf16.mxu1 %v927_v49 }
 0x2e2   :  { %851 = vmatpush3.bf16.msra.mxu1 %v657_v51 }
 0x2e3   :  { %852 = vmatprep.subr.bf16.mxu1 %v927_v49  ;;  %v709_v49 = vld [vmem:[%s1192_s1] sm:$0x3] }
 0x2e6   :  { %853 = vmatpush3.bf16.msra.mxu1 %v656_v54 }
 0x2e9   :  { %855 = vmatmul.mubr.msk.bf16.vlgmr.msra.gmra.mxu1 %vm324_vm2, %v655_v55 }
 0x3a9   :  { %v703_v57 = vpop.f32.mrf.mxu1 }
 0x3aa   :  { %v704_v58 = vadd.f32 %v703_v57, %v664_v56 }
 0x3ab   :  { %v856_v59 = vpop.f32.mrf.mxu1 }
 0x3ac   :  { %v710_v60 = vmul.f32 0.5, %v704_v58  ;;  %v719_v4 = vrot.slane %v704_v58, 6 }
 0x3ad   :  { %v706_v61 = vpop.f32.mrf.mxu1 }
 0x3ae   :  { %v711_v62 = vmul.f32 1.442695, %v710_v60 }
 0x3af   :  { %v857_v63 = vpop.f32.mrf.mxu1 }
 0x3b0   :  { %924 = vpow2.f32 %v711_v62 }
 0x3bd   :  { %v925_v0 = vpop.eup %924 }
 0x3be   :  { %v714_v1 = vrot.slane %v925_v0, 2 }
 0x3c0   :  { %v716_v2 = vmul.f32 %v714_v1, %v709_v49 }
 0x3c2   :  { %v717_v3 = vadd.f32 %v716_v2, %v704_v58 }
 0x3c4   :  { %v721_v5 = vsel %vm127_vm0, %v717_v3, %v719_v4 }
 0x3c5   :  { %v723_v6 = vsel %vm722_vm14, %v721_v5, 0.0 }
 0x3c6   :  { %724 = vst [vmem:[%s1193_s10] sm:$0xff] %v723_v6 }

</bundles_post_ra>
